<compile_context>
chip_gen: v7x
topology: tpu7x:2x2x1
jax: 0.10.0
libtpu: 0.0.40
codegen_flags: <defaults>
</compile_context>

<pallas_src>
import jax
import jax.numpy as jnp
from jax.experimental import pallas as pl
from jax.experimental.pallas import tpu as pltpu

NUM_HIDDEN = 10
_LANE = 128


def _mlp_sin_kernel(x_ref, w_ref, b_ref, o_ref):
    # x_ref: (1, tm)      transposed batch tile, batch on lanes
    # w_ref: (5, HP, HP)  packed, zero-padded transposed weights
    #   w_ref[0][:, 0] = fc1 weight column (in_features == 1)
    #   w_ref[1..3]    = fc2..fc4 weight transposes
    #   w_ref[4][:, 0] = output-layer weight column (out_features == 1)
    # b_ref: (5, HP, 1)   packed, zero-padded biases; b_ref[4][0, 0] = out bias
    x = x_ref[...].astype(jnp.float32)                     # (1, tm)

    # fc1: K=1 matmul == outer product -> broadcast multiply on the VPU.
    h = jnp.sin(w_ref[0][:, 0:1] * x + b_ref[0])           # (HP, tm)

    # fc2..fc4: HPxHP @ HPxtm lane-dense MXU matmuls, f32 accumulation.
    for l in (1, 2, 3):
        h = jnp.sin(
            jnp.dot(w_ref[l], h, preferred_element_type=jnp.float32) + b_ref[l]
        )

    # out layer: N=1 matmul == weighted sublane reduction (VPU mul + XLU sum).
    out = jnp.sum(w_ref[4][:, 0:1] * h, axis=0, keepdims=True) + b_ref[4][0:1, :]

    o_ref[...] = out.astype(o_ref.dtype)                   # (1, tm) lane-dense


def _pack_params(params):
    """Pack the 5 (W, b) pairs into one padded weight slab and one bias slab."""
    (w1, b1), (w2, b2), (w3, b3), (w4, b4), (w5, b5) = params
    h = w1.shape[1]                      # hidden width (10)
    hp = pl.cdiv(h, 8) * 8               # pad to sublane multiple (16)

    wstack = jnp.zeros((5, hp, hp), jnp.float32)
    bstack = jnp.zeros((5, hp, 1), jnp.float32)

    # fc1: W1 is (1, h); store its transpose (h, 1) as column 0.
    wstack = wstack.at[0, :h, 0].set(w1[0, :])
    bstack = bstack.at[0, :h, 0].set(b1.reshape(-1))
    # fc2..fc4: store W^T, zero padded.
    for l, (wl, bl) in enumerate(((w2, b2), (w3, b3), (w4, b4)), start=1):
        wstack = wstack.at[l, :h, :h].set(wl.T)
        bstack = bstack.at[l, :h, 0].set(bl.reshape(-1))
    # output layer: W5 is (h, 1); store as column 0.
    wstack = wstack.at[4, :h, 0].set(w5[:, 0])
    bstack = bstack.at[4, 0, 0].set(b5.reshape(-1)[0])
    return wstack, bstack


def mlp_sin_forward(points, params, *, tm=4096):
    """points: (N, 1) f32. Returns (N, 1) f32, matching the PyTorch module."""
    N, in_features = points.shape
    assert in_features == 1, "module is specified with in_features == 1"
    out_features = params[-1][0].shape[1]
    assert out_features == 1, "module is specified with out_features == 1"

    wstack, bstack = _pack_params(params)

    # Batch on lanes: operate on x as (1, N).
    x_t = points.T                                            # (1, N)

    # Lane-dense tiles: tm is a multiple of 128, as large as the batch allows.
    tm = max(_LANE, (tm // _LANE) * _LANE)
    tm = min(tm, pl.cdiv(N, _LANE) * _LANE)
    n_pad = pl.cdiv(N, tm) * tm
    if n_pad != N:
        x_t = jnp.pad(x_t, ((0, 0), (0, n_pad - N)))

    grid = (n_pad // tm,)

    out_t = pl.pallas_call(
        _mlp_sin_kernel,
        out_shape=jax.ShapeDtypeStruct((out_features, n_pad), points.dtype),
        grid_spec=pltpu.PrefetchScalarGridSpec(
            num_scalar_prefetch=0,
            grid=grid,
            in_specs=[
                pl.BlockSpec((in_features, tm), lambda i: (0, i)),
                # Tiny grid-invariant parameter slabs: one full-array block each
                # (same block index every step -> fetched once, stay resident).
                pl.BlockSpec(wstack.shape, lambda i: (0, 0, 0)),
                pl.BlockSpec(bstack.shape, lambda i: (0, 0, 0)),
            ],
            out_specs=pl.BlockSpec((out_features, tm), lambda i: (0, i)),
        ),
        compiler_params=pltpu.CompilerParams(
            dimension_semantics=("parallel",)),
    )(x_t, wstack, bstack)

    return out_t[:, :N].T                                     # (N, 1)


def init_linear(key, fan_in, fan_out):
    """Deterministic PyTorch-style (uniform) init; bias kept 2D (1, fan_out)."""
    kw, kb = jax.random.split(key)
    bound = 1.0 / jnp.sqrt(jnp.asarray(fan_in, jnp.float32))
    w = jax.random.uniform(kw, (fan_in, fan_out), jnp.float32, -bound, bound)
    b = jax.random.uniform(kb, (1, fan_out), jnp.float32, -bound, bound)
    return w, b


def reference_forward(points, params):
    h = points
    (w1, b1), (w2, b2), (w3, b3), (w4, b4), (w5, b5) = params
    h = jnp.sin(h @ w1 + b1)
    h = jnp.sin(h @ w2 + b2)
    h = jnp.sin(h @ w3 + b3)
    h = jnp.sin(h @ w4 + b4)
    return h @ w5 + b5


if __name__ == "__main__":
    key = jax.random.PRNGKey(0)
    k_in, k1, k2, k3, k4, k5 = jax.random.split(key, 6)

    in_features, hdim, out_features = 1, NUM_HIDDEN, 1
    N = 128  # batch of sample points

    params = (
        init_linear(k1, in_features, hdim),
        init_linear(k2, hdim, hdim),
        init_linear(k3, hdim, hdim),
        init_linear(k4, hdim, hdim),
        init_linear(k5, hdim, out_features),
    )

    points = jax.random.uniform(k_in, (N, in_features), jnp.float32, -3.14, 3.14)

    out = mlp_sin_forward(points, params)
    out = jax.block_until_ready(out)

    ref = reference_forward(points, params)
    assert out.shape == (N, out_features)
    assert jnp.allclose(out, ref, atol=1e-5, rtol=1e-5), "mismatch vs reference"

    print("KERNEL_OK")
</pallas_src>

<mosaic_0001>
module attributes {stable_mosaic.version = 11 : i64} {
  func.func @_mlp_sin_kernel(%arg0: i32, %arg1: memref<1x128xf32, #tpu.memory_space<vmem>>, %arg2: memref<5x16x16xf32, #tpu.memory_space<vmem>>, %arg3: memref<5x16x1xf32, #tpu.memory_space<vmem>>, %arg4: memref<1x128xf32, #tpu.memory_space<vmem>>) attributes {dimension_semantics = [#tpu.dimension_semantics<parallel>], iteration_bounds = array<i64: 1>, scalar_prefetch = 0 : i64, scratch_operands = 0 : i64, tpu.core_type = #tpu.core_type<tc>, window_params = [{transform_indices = @transform_0, window_bounds = array<i64: 1, 128>}, {pipeline_mode = #tpu.pipeline_mode<synchronous>, transform_indices = @transform_1, window_bounds = array<i64: 5, 16, 16>}, {pipeline_mode = #tpu.pipeline_mode<synchronous>, transform_indices = @transform_2, window_bounds = array<i64: 5, 16, 1>}, {transform_indices = @transform_3, window_bounds = array<i64: 1, 128>}]} {
    %c0 = arith.constant 0 : index
    %c0_0 = arith.constant 0 : index
    %0 = vector.load %arg1[%c0, %c0_0] : memref<1x128xf32, #tpu.memory_space<vmem>>, vector<1x128xf32>
    %c0_1 = arith.constant 0 : index
    %c0_2 = arith.constant 0 : index
    %c0_3 = arith.constant 0 : index
    %1 = vector.load %arg2[%c0_1, %c0_2, %c0_3] : memref<5x16x16xf32, #tpu.memory_space<vmem>>, vector<1x16x16xf32>
    %2 = vector.shape_cast %1 : vector<1x16x16xf32> to vector<16x16xf32>
    %3 = vector.extract_strided_slice %2 {offsets = [0, 0], sizes = [16, 1], strides = [1, 1]} : vector<16x16xf32> to vector<16x1xf32>
    %4 = vector.broadcast %3 : vector<16x1xf32> to vector<16x128xf32>
    %5 = vector.broadcast %0 : vector<1x128xf32> to vector<16x128xf32>
    %6 = arith.mulf %4, %5 : vector<16x128xf32>
    %c0_4 = arith.constant 0 : index
    %c0_5 = arith.constant 0 : index
    %c0_6 = arith.constant 0 : index
    %7 = vector.load %arg3[%c0_4, %c0_5, %c0_6] : memref<5x16x1xf32, #tpu.memory_space<vmem>>, vector<1x16x1xf32>
    %8 = vector.shape_cast %7 : vector<1x16x1xf32> to vector<16x1xf32>
    %9 = vector.broadcast %8 : vector<16x1xf32> to vector<16x128xf32>
    %10 = arith.addf %6, %9 : vector<16x128xf32>
    %11 = math.sin %10 : vector<16x128xf32>
    %c1 = arith.constant 1 : index
    %c0_7 = arith.constant 0 : index
    %c0_8 = arith.constant 0 : index
    %12 = vector.load %arg2[%c1, %c0_7, %c0_8] : memref<5x16x16xf32, #tpu.memory_space<vmem>>, vector<1x16x16xf32>
    %13 = vector.shape_cast %12 : vector<1x16x16xf32> to vector<16x16xf32>
    %cst = arith.constant dense<0.000000e+00> : vector<16x128xf32>
    %14 = tpu.matmul %13, %11, %cst {dimension_numbers = #tpu.dot_dimension_numbers<[1], [0], [0], [1], [0, 0, 1, 1], [], []>} : vector<16x16xf32>, vector<16x128xf32>, vector<16x128xf32> -> vector<16x128xf32>
    %c1_9 = arith.constant 1 : index
    %c0_10 = arith.constant 0 : index
    %c0_11 = arith.constant 0 : index
    %15 = vector.load %arg3[%c1_9, %c0_10, %c0_11] : memref<5x16x1xf32, #tpu.memory_space<vmem>>, vector<1x16x1xf32>
    %16 = vector.shape_cast %15 : vector<1x16x1xf32> to vector<16x1xf32>
    %17 = vector.broadcast %16 : vector<16x1xf32> to vector<16x128xf32>
    %18 = arith.addf %14, %17 : vector<16x128xf32>
    %19 = math.sin %18 : vector<16x128xf32>
    %c2 = arith.constant 2 : index
    %c0_12 = arith.constant 0 : index
    %c0_13 = arith.constant 0 : index
    %20 = vector.load %arg2[%c2, %c0_12, %c0_13] : memref<5x16x16xf32, #tpu.memory_space<vmem>>, vector<1x16x16xf32>
    %21 = vector.shape_cast %20 : vector<1x16x16xf32> to vector<16x16xf32>
    %cst_14 = arith.constant dense<0.000000e+00> : vector<16x128xf32>
    %22 = tpu.matmul %21, %19, %cst_14 {dimension_numbers = #tpu.dot_dimension_numbers<[1], [0], [0], [1], [0, 0, 1, 1], [], []>} : vector<16x16xf32>, vector<16x128xf32>, vector<16x128xf32> -> vector<16x128xf32>
    %c2_15 = arith.constant 2 : index
    %c0_16 = arith.constant 0 : index
    %c0_17 = arith.constant 0 : index
    %23 = vector.load %arg3[%c2_15, %c0_16, %c0_17] : memref<5x16x1xf32, #tpu.memory_space<vmem>>, vector<1x16x1xf32>
    %24 = vector.shape_cast %23 : vector<1x16x1xf32> to vector<16x1xf32>
    %25 = vector.broadcast %24 : vector<16x1xf32> to vector<16x128xf32>
    %26 = arith.addf %22, %25 : vector<16x128xf32>
    %27 = math.sin %26 : vector<16x128xf32>
    %c3 = arith.constant 3 : index
    %c0_18 = arith.constant 0 : index
    %c0_19 = arith.constant 0 : index
    %28 = vector.load %arg2[%c3, %c0_18, %c0_19] : memref<5x16x16xf32, #tpu.memory_space<vmem>>, vector<1x16x16xf32>
    %29 = vector.shape_cast %28 : vector<1x16x16xf32> to vector<16x16xf32>
    %cst_20 = arith.constant dense<0.000000e+00> : vector<16x128xf32>
    %30 = tpu.matmul %29, %27, %cst_20 {dimension_numbers = #tpu.dot_dimension_numbers<[1], [0], [0], [1], [0, 0, 1, 1], [], []>} : vector<16x16xf32>, vector<16x128xf32>, vector<16x128xf32> -> vector<16x128xf32>
    %c3_21 = arith.constant 3 : index
    %c0_22 = arith.constant 0 : index
    %c0_23 = arith.constant 0 : index
    %31 = vector.load %arg3[%c3_21, %c0_22, %c0_23] : memref<5x16x1xf32, #tpu.memory_space<vmem>>, vector<1x16x1xf32>
    %32 = vector.shape_cast %31 : vector<1x16x1xf32> to vector<16x1xf32>
    %33 = vector.broadcast %32 : vector<16x1xf32> to vector<16x128xf32>
    %34 = arith.addf %30, %33 : vector<16x128xf32>
    %35 = math.sin %34 : vector<16x128xf32>
    %c4 = arith.constant 4 : index
    %c0_24 = arith.constant 0 : index
    %c0_25 = arith.constant 0 : index
    %36 = vector.load %arg2[%c4, %c0_24, %c0_25] : memref<5x16x16xf32, #tpu.memory_space<vmem>>, vector<1x16x16xf32>
    %37 = vector.shape_cast %36 : vector<1x16x16xf32> to vector<16x16xf32>
    %38 = vector.extract_strided_slice %37 {offsets = [0, 0], sizes = [16, 1], strides = [1, 1]} : vector<16x16xf32> to vector<16x1xf32>
    %39 = vector.broadcast %38 : vector<16x1xf32> to vector<16x128xf32>
    %40 = arith.mulf %39, %35 : vector<16x128xf32>
    %cst_26 = arith.constant dense<0.000000e+00> : vector<128xf32>
    %41 = vector.multi_reduction <add>, %40, %cst_26 [0] : vector<16x128xf32> to vector<128xf32>
    %42 = vector.shape_cast %41 : vector<128xf32> to vector<1x128xf32>
    %c4_27 = arith.constant 4 : index
    %c0_28 = arith.constant 0 : index
    %c0_29 = arith.constant 0 : index
    %43 = vector.load %arg3[%c4_27, %c0_28, %c0_29] : memref<5x16x1xf32, #tpu.memory_space<vmem>>, vector<1x16x1xf32>
    %44 = vector.shape_cast %43 : vector<1x16x1xf32> to vector<16x1xf32>
    %45 = vector.extract_strided_slice %44 {offsets = [0, 0], sizes = [1, 1], strides = [1, 1]} : vector<16x1xf32> to vector<1x1xf32>
    %46 = vector.broadcast %45 : vector<1x1xf32> to vector<1x128xf32>
    %47 = arith.addf %42, %46 : vector<1x128xf32>
    %c0_30 = arith.constant 0 : index
    %c0_31 = arith.constant 0 : index
    %48 = vector.load %arg4[%c0_30, %c0_31] : memref<1x128xf32, #tpu.memory_space<vmem>>, vector<1x128xf32>
    tpu.vector_store %arg4[%c0_30, %c0_31], %47 {strides = array<i32>} : memref<1x128xf32, #tpu.memory_space<vmem>>, vector<1x128xf32>,
    return
  }
  func.func @transform_0(%arg0: i32) -> (i32, i32) {
    %c0_i32 = arith.constant 0 : i32
    %c0_i32_0 = arith.constant 0 : i32
    return %c0_i32, %arg0 : i32, i32
  }
  func.func @transform_1(%arg0: i32) -> (i32, i32, i32) {
    %c0_i32 = arith.constant 0 : i32
    %c0_i32_0 = arith.constant 0 : i32
    %c0_i32_1 = arith.constant 0 : i32
    %c0_i32_2 = arith.constant 0 : i32
    return %c0_i32, %c0_i32_0, %c0_i32_1 : i32, i32, i32
  }
  func.func @transform_2(%arg0: i32) -> (i32, i32, i32) {
    %c0_i32 = arith.constant 0 : i32
    %c0_i32_0 = arith.constant 0 : i32
    %c0_i32_1 = arith.constant 0 : i32
    %c0_i32_2 = arith.constant 0 : i32
    return %c0_i32, %c0_i32_0, %c0_i32_1 : i32, i32, i32
  }
  func.func @transform_3(%arg0: i32) -> (i32, i32) {
    %c0_i32 = arith.constant 0 : i32
    %c0_i32_0 = arith.constant 0 : i32
    return %c0_i32, %arg0 : i32, i32
  }
}

</mosaic_0001>

<bundles_post_ra>
// kernel: tpu_custom_call.1
= control target key start
LH: loop header
LB: loop body
LE: loop exit
PB: predicated region body
PF: predicated region fallthrough
CT: control target
= control target key end

     0   :  { %v1416_v2 = vmov 0   ;;  %s1876_s0 = inlined_call_operand.vmem [shape: f32[1,128], index: 0, kind: input, shape index: {}]   ;;  %s1877_s1 = inlined_call_operand.vmem [shape: f32[5,16,16], index: 1, kind: input, shape index: {}]   ;;  %s1878_s2 = inlined_call_operand.vmem [shape: f32[5,16,1], index: 2, kind: input, shape index: {}]   ;;  %s1879_s3 = inlined_call_operand.hbm [shape: f32[1,128], index: 3, kind: output, shape index: {}]  }
   0x1   :  { %v36_v0 = vld [vmem:[%s1878_s2] sm:$0xff]  ;;  %1359 = vset.pattern.permute.xlu1 %v1416_v2  ;;  %1358 = vset.pattern.permute.xlu0 %v1416_v2  ;;  %v37_v3 = vld [vmem:[%s1878_s2 + $0x8] sm:$0xff] }
   0x2   :  { %v16_v1 = vld [vmem:[%s1877_s1] sm:$0xff]  ;;  %40 = vperm.xlu1 %1359, %v36_v0   ;;  %v17_v4 = vld [vmem:[%s1877_s1 + $0x8] sm:$0xff] }
   0x3   :  { %20 = vperm.xlu0 %1358, %v16_v1  }
   0x4   :  { %8 = vsyncpa [#allocation3], 0  ;;  %v1231_v5 = vld [vmem:[%s1878_s2 + $0x18] sm:$0xff]  ;;  %v1230_v6 = vld [vmem:[%s1878_s2 + $0x10] sm:$0xff]  ;;  %vm274_vm0 = vcmask 130048  }
   0x5   :  { %v1245_v7 = vld [vmem:[%s1878_s2 + $0x28] sm:$0xff]  ;;  %v1244_v8 = vld [vmem:[%s1878_s2 + $0x20] sm:$0xff]  ;;  %v1259_v9 = vld [vmem:[%s1878_s2 + $0x38] sm:$0xff]  ;;  %v1417_v42 = vmov 2102212464  }
   0x6   :  { %45 = vperm.xlu1 %1359, %v37_v3   ;;  %v1258_v10 = vld [vmem:[%s1878_s2 + $0x30] sm:$0xff]  ;;  %v1271_v11 = vld [vmem:[%s1877_s1 + $0x48] sm:$0xff]  ;;  %v1270_v12 = vld [vmem:[%s1877_s1 + $0x40] sm:$0xff]  ;;  %v1418_v44 = vmov 920167782  }
   0x7   :  { %25 = vperm.xlu0 %1358, %v17_v4   ;;  %v1272_v13 = vld [vmem:[%s1878_s2 + $0x40] sm:$0xff]  ;;  %v1228_v14 = vld [vmem:[%s1877_s1 + $0x10] sm:$0xff]  ;;  %v1419_v48 = vmov 1326507024   ;;  %v1420_v52 = vmov 683565275  }
   0x8   :  { %1289 = vmatprep.mubr.msk.f32.mxu0 %vm274_vm0, %v1228_v14  ;;  %v1219_v15 = vld [vmem:[%s1876_s0] ss:$0 sm:$0xff]  ;;  %v1421_v54 = vmov 2475754826   ;;  %v1422_v56 = vmov 2131351028  }
   0xa   :  { %271 = vperm.xlu1 %1359, %v1231_v5  }
   0xb   :  { %266 = vperm.xlu0 %1358, %v1230_v6  }
   0xe   :  { %577 = vperm.xlu1 %1359, %v1245_v7  }
   0xf   :  { %572 = vperm.xlu0 %1358, %v1244_v8  }
  0x12   :  { %882 = vperm.xlu1 %1359, %v1259_v9  }
  0x13   :  { %877 = vperm.xlu0 %1358, %v1258_v10  }
  0x16   :  { %1184 = vperm.xlu1 %1359, %v1271_v11  }
  0x17   :  { %1179 = vperm.xlu0 %1358, %v1270_v12  }
  0x1b   :  { %1200 = vperm.xlu0 %1358, %v1272_v13  }
  0x81   :  { %v41_v16 = vpop.permute.xlu1 %40 }
  0x82   :  { %v21_v17 = vpop.permute.xlu0 %20 }
  0x83   :  { %v34_v18 = vmul.f32 %v1219_v15, %v21_v17 }
  0x85   :  { %v1490_v19 = vadd.f32 %v41_v16, %v34_v18  ;;  %v46_v24 = vpop.permute.xlu1 %45 }
  0x86   :  { %v26_v20 = vpop.permute.xlu0 %25 }
  0x87   :  { %v53_v21 = vand.u32 2139095040, %v1490_v19  ;;  %v35_v22 = vmul.f32 %v1219_v15, %v26_v20  ;;  %v50_v23 = vand.u32 2147483647, %v1490_v19  ;;  %vm52_vm15 = vcmp.lt.s32.totalorder %v1490_v19, 0 }
  0x89   :  { %v54_v25 = vshrl.u32 %v53_v21, 23  ;;  %v1494_v26 = vadd.f32 %v46_v24, %v35_v22  ;;  %v57_v29 = vand.u32 8388607, %v50_v23 }
  0x8b   :  { %v1220_v27 = vadd.s32 4294967169, %v54_v25  ;;  %v157_v28 = vand.u32 2139095040, %v1494_v26  ;;  %v154_v30 = vand.u32 2147483647, %v1494_v26  ;;  %v58_v34 = vor.u32 8388608, %v57_v29 }
  0x8d   :  { %v60_v31 = vadd.s32 1, %v1220_v27  ;;  %v158_v32 = vshrl.u32 %v157_v28, 23  ;;  %v1502_v36 = vand.u32 8388607, %v154_v30  ;;  %v1504_v41 = vshll.u32 %v58_v34, 8 }
  0x8f   :  { %vm61_vm1 = vcmp.gt.s32.totalorder %v60_v31, 0  ;;  %v1224_v33 = vadd.s32 4294967169, %v158_v32  ;;  %v162_v46 = vor.u32 8388608, %v1502_v36 }
  0x90   :  { %v62_v35 = vsel %vm61_vm1, %v60_v31, 0  ;;  %vm1584_vm1 = vcmp.le.f32.partialorder %v50_v23, 0.7853982 }
  0x91   :  { %v63_v37 = vshrl.u32 %v62_v35, 5  ;;  %v64_v38 = vand.u32 31, %v62_v35  ;;  %v164_v39 = vadd.s32 1, %v1224_v33 }
  0x93   :  { %v65_v40 = vsub.s32 32, %v64_v38  ;;  %v76_v43 = vshll.u32 %v1417_v42, %v64_v38  ;;  %v79_v45 = vshll.u32 %v1418_v44, %v64_v38  ;;  %vm165_vm2 = vcmp.gt.s32.totalorder %v164_v39, 0 }
  0x94   :  { %vm85_vm3 = vcmp.lt.s32.totalorder %v63_v37, 4  ;;  %v166_v50 = vsel %vm165_vm2, %v164_v39, 0  ;;  %v67_v53 = vshll.u32 %v1420_v52, %v64_v38  ;;  %v70_v60 = vshll.u32 %v1421_v54, %v64_v38 }
  0x95   :  { %v77_v47 = vshrl.u32 %v1418_v44, %v65_v40  ;;  %v80_v49 = vshrl.u32 %v1419_v48, %v65_v40  ;;  %v168_v51 = vand.u32 31, %v166_v50  ;;  %v68_v55 = vshrl.u32 %v1421_v54, %v65_v40 }
  0x96   :  { %v71_v57 = vshrl.u32 %v1422_v56, %v65_v40  ;;  %v74_v61 = vshrl.u32 %v1417_v42, %v65_v40  ;;  %v1516_v62 = vshrl.u32 %v166_v50, 5  ;;  %v73_v0 = vshll.u32 %v1422_v56, %v64_v38 }
  0x97   :  { %v78_v58 = vor.u32 %v77_v47, %v76_v43  ;;  %v81_v59 = vor.u32 %v80_v49, %v79_v45  ;;  %v169_v63 = vsub.s32 32, %v168_v51  ;;  %vm82_vm4 = vcmp.lt.s32.totalorder %v63_v37, 1 }
  0x98   :  { %v183_v2 = vshll.u32 %v1418_v44, %v168_v51  ;;  %v69_v3 = vor.u32 %v68_v55, %v67_v53  ;;  %v72_v4 = vor.u32 %v71_v57, %v70_v60  ;;  %v75_v8 = vor.u32 %v74_v61, %v73_v0 }
  0x99   :  { %v91_v1 = vsel %vm85_vm3, %v78_v58, 920167782  ;;  %v95_v5 = vsel %vm85_vm3, %v81_v59, 1326507024  ;;  %v181_v6 = vshrl.u32 %v1418_v44, %v169_v63  ;;  %v184_v7 = vshrl.u32 %v1419_v48, %v169_v63 }
  0x9a   :  { %v180_v9 = vshll.u32 %v1417_v42, %v168_v51  ;;  %v66_v10 = vshrl.u32 %v1420_v52, %v65_v40  ;;  %vm84_vm5 = vcmp.lt.s32.totalorder %v63_v37, 3  ;;  %v90_v11 = vsel %vm82_vm4, %v69_v3, %v72_v4 }
  0x9b   :  { %v185_v12 = vor.u32 %v184_v7, %v183_v2  ;;  %vm83_vm6 = vcmp.lt.s32.totalorder %v63_v37, 2  ;;  %v87_v13 = vsel %vm85_vm3, %v75_v8, 2102212464  ;;  %v92_v14 = vsel %vm84_vm5, %v75_v8, %v91_v1 }
  0x9c   :  { %vm189_vm7 = vcmp.lt.s32.totalorder %v1516_v62, 4  ;;  %v93_v15 = vsel %vm83_vm6, %v90_v11, %v92_v14  ;;  %v94_v16 = vsel %vm82_vm4, %v72_v4, %v75_v8  ;;  %v96_v17 = vsel %vm84_vm5, %v78_v58, %v95_v5 }
  0x9d   :  { %v182_v18 = vor.u32 %v181_v6, %v180_v9  ;;  %v86_v20 = vsel %vm82_vm4, %v66_v10, %v69_v3  ;;  %v88_v21 = vsel %vm84_vm5, %v72_v4, %v87_v13  ;;  %v97_v22 = vsel %vm83_vm6, %v94_v16, %v96_v17 }
  0x9e   :  { %v1534_v24 = vmul.u32.u64.low %v1504_v41, %v97_v22  ;;  %v1535_v25 = vmul.u32.u64.high %v1504_v41, %v97_v22, %v1534_v24  ;;  %v1538_v27 = vmul.u32.u64.low %v1504_v41, %v93_v15  ;;  %v1539_v28 = vmul.u32.u64.high %v1504_v41, %v93_v15, %v1538_v27 }
  0x9f   :  { %v199_v29 = vsel %vm189_vm7, %v185_v12, 1326507024  ;;  %v171_v31 = vshll.u32 %v1420_v52, %v168_v51  ;;  %v172_v32 = vshrl.u32 %v1421_v54, %v169_v63  ;;  %v89_v33 = vsel %vm83_vm6, %v86_v20, %v88_v21 }
  0xa0   :  { %v174_v34 = vshll.u32 %v1421_v54, %v168_v51  ;;  %v175_v35 = vshrl.u32 %v1422_v56, %v169_v63  ;;  %v178_v36 = vshrl.u32 %v1417_v42, %v169_v63  ;;  %v195_v38 = vsel %vm189_vm7, %v182_v18, 920167782 }
  0xa1   :  { %v173_v39 = vor.u32 %v172_v32, %v171_v31  ;;  %v177_v40 = vshll.u32 %v1422_v56, %v168_v51  ;;  %v202_v43 = vshll.u32 %v162_v46, 8  ;;  %vm107_vm8 = vc.u32 %v1535_v25, %v1538_v27 }
  0xa2   :  { %v108_v45 = vadd.s32 1, %v1539_v28  ;;  %v176_v47 = vor.u32 %v175_v35, %v174_v34  ;;  %vm188_vm9 = vcmp.lt.s32.totalorder %v1516_v62, 3  ;;  %v105_v37 = vmul.u32 %v1504_v41, %v89_v33 }
  0xa3   :  { %v179_v49 = vor.u32 %v178_v36, %v177_v40  ;;  %vm186_vm10 = vcmp.lt.s32.totalorder %v1516_v62, 1  ;;  %v200_v50 = vsel %vm188_vm9, %v182_v18, %v199_v29  ;;  %v170_v51 = vshrl.u32 %v1420_v52, %v169_v63 }
  0xa4   :  { %v109_v53 = vsel %vm107_vm8, %v108_v45, %v1539_v28  ;;  %vm187_vm11 = vcmp.lt.s32.totalorder %v1516_v62, 2  ;;  %v194_v46 = vsel %vm186_vm10, %v173_v39, %v176_v47  ;;  %v106_v22 = vadd.s32 %v1538_v27, %v1535_v25 }
  0xa5   :  { %v110_v55 = vadd.s32 %v109_v53, %v105_v37  ;;  %v191_v57 = vsel %vm189_vm7, %v179_v49, 2102212464  ;;  %v196_v41 = vsel %vm188_vm9, %v179_v49, %v195_v38  ;;  %v198_v58 = vsel %vm186_vm10, %v176_v47, %v179_v49 }
  0xa6   :  { %v190_v59 = vsel %vm186_vm10, %v170_v51, %v173_v39  ;;  %v197_v60 = vsel %vm187_vm11, %v194_v46, %v196_v41  ;;  %v201_v61 = vsel %vm187_vm11, %v198_v58, %v200_v50  ;;  %v192_v1 = vsel %vm188_vm9, %v176_v47, %v191_v57 }
  0xa7   :  { %v111_v0 = vadd.s32 536870912, %v110_v55  ;;  %v1568_v2 = vmul.u32.u64.low %v202_v43, %v201_v61  ;;  %v1569_v63 = vmul.u32.u64.high %v202_v43, %v201_v61, %v1568_v2  ;;  %v193_v6 = vsel %vm187_vm11, %v190_v59, %v192_v1 }
  0xa8   :  { %v1571_v3 = vmul.u32.u64.low %v202_v43, %v197_v60  ;;  %v1572_v4 = vmul.u32.u64.high %v202_v43, %v197_v60, %v1571_v3  ;;  %v209_v10 = vmul.u32 %v202_v43, %v193_v6  ;;  %vm156_vm2 = vcmp.lt.s32.totalorder %v1494_v26, 0 }
  0xa9   :  { %v112_v5 = vshrl.u32 %v111_v0, 30  ;;  %vm155_vm3 = vcmp.le.f32.partialorder %v154_v30, 0.7853982  ;;  %vm142_vm10 = vweird.f32 %v1490_v19  ;;  %vm246_vm11 = vweird.f32 %v1494_v26 }
  0xaa   :  { %vm211_vm12 = vc.u32 %v1569_v63, %v1571_v3  ;;  %v212_v8 = vadd.s32 1, %v1572_v4  ;;  %v210_v49 = vadd.s32 %v1571_v3, %v1569_v63 }
  0xab   :  { %v113_v7 = vshll.u32 %v112_v5, 30  ;;  %v136_v61 = vsub.s32 4, %v112_v5 }
  0xac   :  { %v213_v11 = vsel %vm211_vm12, %v212_v8, %v1572_v4 }
  0xad   :  { %v114_v9 = vsub.s32 %v110_v55, %v113_v7  ;;  %v214_v62 = vadd.s32 %v213_v11, %v209_v10  ;;  %v137_v23 = vsel %vm52_vm15, %v136_v61, %v112_v5 }
  0xae   :  { %v139_v4 = vsel %vm1584_vm1, 0, %v137_v23 }
  0xaf   :  { %v116_v12 = vsub.s32 0, %v114_v9  ;;  %v215_v14 = vadd.s32 536870912, %v214_v62 }
  0xb1   :  { %v1221_v13 = vmin.u32 %v116_v12, %v114_v9  ;;  %v216_v16 = vshrl.u32 %v215_v14, 30 }
  0xb3   :  { %v118_v15 = vclz %v1221_v13  ;;  %v217_v18 = vshll.u32 %v216_v16, 30  ;;  %v240_v63 = vsub.s32 4, %v216_v16 }
  0xb5   :  { %v1222_v17 = vadd.s32 4294967294, %v118_v15  ;;  %v218_v21 = vsub.s32 %v214_v62, %v217_v18  ;;  %v241_v7 = vsel %vm156_vm2, %v240_v63, %v216_v16 }
  0xb6   :  { %v243_v10 = vsel %vm155_vm3, 0, %v241_v7 }
  0xb7   :  { %vm1223_vm13 = vcmp.lt.s32.totalorder %v1222_v17, 0  ;;  %v220_v29 = vsub.s32 0, %v218_v21  ;;  %v247_v5 = vadd.s32 3, %v243_v10 }
  0xb8   :  { %v121_v20 = vsel %vm1223_vm13, 0, %v1222_v17 }
  0xb9   :  { %v122_v24 = vsub.s32 32, %v121_v20  ;;  %v126_v28 = vsub.s32 4294967266, %v121_v20  ;;  %v123_v31 = vshll.u32 %v114_v9, %v121_v20  ;;  %v1225_v34 = vmin.u32 %v220_v29, %v218_v21 }
  0xba   :  { %v143_v9 = vadd.s32 3, %v139_v4  ;;  %v248_v15 = vand.u32 3, %v247_v5 }
  0xbb   :  { %v124_v32 = vshrl.u32 %v106_v22, %v122_v24  ;;  %v127_v33 = vadd.s32 127, %v126_v28  ;;  %v222_v38 = vclz %v1225_v34  ;;  %v1229_v34 = vld [vmem:[%s1877_s1 + $0x18] sm:$0xff] }
  0xbc   :  { %v144_v62 = vand.u32 3, %v143_v9  ;;  %vm253_vm7 = vcmp.eq.s32.totalorder %v248_v15, 2  ;;  %vm250_vm8 = vcmp.eq.s32.totalorder %v248_v15, 0  ;;  %vm249_vm9 = vcmp.lt.s32.totalorder %v248_v15, 2 }
  0xbd   :  { %v125_v35 = vor.u32 %v124_v32, %v123_v31  ;;  %v128_v36 = vshll.u32 %v127_v33, 23  ;;  %v1226_v40 = vadd.s32 4294967294, %v222_v38 }
  0xbe   :  { %vm146_vm4 = vcmp.eq.s32.totalorder %v144_v62, 0  ;;  %vm149_vm5 = vcmp.eq.s32.totalorder %v144_v62, 2  ;;  %vm145_vm6 = vcmp.lt.s32.totalorder %v144_v62, 2 }
  0xbf   :  { %v129_v39 = vor.u32 4788187, %v128_v36  ;;  %v132_v45 = vcvt.s32.f32 %v125_v35  ;;  %vm1227_vm14 = vcmp.lt.s32.totalorder %v1226_v40, 0  ;;  %v1242_v35 = vld [vmem:[%s1877_s1 + $0x20] sm:$0xff]  ;;  %v267_v36 = vpop.permute.xlu0 %266 }
  0xc0   :  { %v225_v37 = vsel %vm1227_vm14, 0, %v1226_v40  ;;  %1296 = vmatprep.mubr.msk.f32.mxu1 %vm274_vm0, %v1242_v35 }
  0xc1   :  { %v130_v43 = vand.u32 2147483647, %v129_v39  ;;  %v226_v25 = vsub.s32 32, %v225_v37  ;;  %v230_v27 = vsub.s32 4294967266, %v225_v37  ;;  %v227_v53 = vshll.u32 %v218_v21, %v225_v37 }
  0xc3   :  { %v133_v47 = vmul.f32 %v132_v45, %v130_v43  ;;  %v228_v51 = vshrl.u32 %v210_v49, %v226_v25  ;;  %v231_v46 = vadd.s32 127, %v230_v27 }
  0xc5   :  { %v134_v50 = vxor.u32 2147483648, %v133_v47  ;;  %v229_v41 = vor.u32 %v228_v51, %v227_v53  ;;  %v232_v58 = vshll.u32 %v231_v46, 23 }
  0xc7   :  { %v135_v55 = vsel %vm52_vm15, %v134_v50, %v133_v47  ;;  %v233_v60 = vor.u32 4788187, %v232_v58  ;;  %v236_v1 = vcvt.s32.f32 %v229_v41 }
  0xc8   :  { %v138_v59 = vsel %vm1584_vm1, %v1490_v19, %v135_v55  ;;  %v272_v19 = vpop.permute.xlu1 %271 }
  0xc9   :  { %1360 = vcosq.f32 %v138_v59  ;;  %v234_v0 = vand.u32 2147483647, %v233_v60 }
  0xca   :  { %1362 = vsinq.f32 %v138_v59 }
  0xcb   :  { %v237_v2 = vmul.f32 %v236_v1, %v234_v0 }
  0xcd   :  { %v238_v3 = vxor.u32 2147483648, %v237_v2 }
  0xcf   :  { %v239_v6 = vsel %vm156_vm2, %v238_v3, %v237_v2 }
  0xd0   :  { %v242_v8 = vsel %vm155_vm3, %v1494_v26, %v239_v6 }
  0xd1   :  { %1364 = vcosq.f32 %v242_v8 }
  0xd2   :  { %1366 = vsinq.f32 %v242_v8 }
  0xd3   :  { %v1361_v11 = vpop.eup %1360 }
  0xd4   :  { %v1363_v12 = vpop.eup %1362  ;;  %v150_v14 = vxor.u32 2147483648, %v1361_v11 }
  0xd5   :  { %v147_v13 = vxor.u32 2147483648, %v1363_v12 }
  0xd6   :  { %v151_v30 = vsel %vm149_vm5, %v150_v14, %v1363_v12 }
  0xd7   :  { %v148_v18 = vsel %vm146_vm4, %v1361_v11, %v147_v13 }
  0xd8   :  { %v152_v22 = vsel %vm145_vm6, %v148_v18, %v151_v30 }
  0xd9   :  { %v153_v31 = vsel %vm142_vm10, nan, %v152_v22 }
  0xdb   :  { %v1365_v17 = vpop.eup %1364 }
  0xdc   :  { %v1367_v20 = vpop.eup %1366  ;;  %v254_v16 = vxor.u32 2147483648, %v1365_v17 }
  0xdd   :  { %v251_v21 = vxor.u32 2147483648, %v1367_v20 }
  0xde   :  { %v255_v24 = vsel %vm253_vm7, %v254_v16, %v1367_v20 }
  0xdf   :  { %v252_v28 = vsel %vm250_vm8, %v1365_v17, %v251_v21 }
  0xe0   :  { %v256_v29 = vsel %vm249_vm9, %v252_v28, %v255_v24 }
  0xe1   :  { %v257_v32 = vsel %vm246_vm11, nan, %v256_v29 }
  0xe2   :  { %v1306_v33 = vpack.c.bf16 %v257_v32, %v153_v31 }
  0xe4   :  { %1307 = vmatprep.subr.bf16.mxu0 %v1306_v33 }
  0xe5   :  { %1309 = vmatpush3.bf16.msra.mxu0 %v1306_v33 }
  0xe8   :  { %1290 = vmatmul.mubr.msk.f32.vlgmr.msra.gmra.mrb[0].mxu0 %vm274_vm0, %v1229_v34 }
 0x1bb   :  { %v1291_v26 = vpop.f32.mrb[0].mxu0 }
 0x1bc   :  { %v1609_v38 = vadd.f32 %v1291_v26, %v272_v19  ;;  %v347_v39 = vpop.f32.mrb[1].mxu0 }
 0x1bd   :  { %v1611_v40 = vadd.f32 %v347_v39, %v267_v36 }
 0x1be   :  { %v460_v43 = vand.u32 2147483647, %v1609_v38  ;;  %v463_v45 = vand.u32 2139095040, %v1609_v38  ;;  %vm462_vm11 = vcmp.lt.s32.totalorder %v1609_v38, 0 }
 0x1bf   :  { %v359_v47 = vand.u32 2139095040, %v1611_v40  ;;  %v356_v25 = vand.u32 2147483647, %v1611_v40 }
 0x1c0   :  { %v464_v37 = vshrl.u32 %v463_v45, 23  ;;  %v467_v49 = vand.u32 8388607, %v460_v43 }
 0x1c1   :  { %v360_v27 = vshrl.u32 %v359_v47, 23  ;;  %v363_v55 = vand.u32 8388607, %v356_v25 }
 0x1c2   :  { %v1238_v50 = vadd.s32 4294967169, %v464_v37  ;;  %v468_v46 = vor.u32 8388608, %v467_v49 }
 0x1c3   :  { %v1234_v53 = vadd.s32 4294967169, %v360_v27  ;;  %v364_v0 = vor.u32 8388608, %v363_v55 }
 0x1c4   :  { %v470_v51 = vadd.s32 1, %v1238_v50  ;;  %v1621_v61 = vshll.u32 %v468_v46, 8 }
 0x1c5   :  { %v366_v57 = vadd.s32 1, %v1234_v53 }
 0x1c6   :  { %vm471_vm12 = vcmp.gt.s32.totalorder %v470_v51, 0 }
 0x1c7   :  { %v472_v41 = vsel %vm471_vm12, %v470_v51, 0  ;;  %vm367_vm13 = vcmp.gt.s32.totalorder %v366_v57, 0  ;;  %vm461_vm12 = vcmp.le.f32.partialorder %v460_v43, 0.7853982 }
 0x1c8   :  { %v473_v58 = vshrl.u32 %v472_v41, 5  ;;  %v474_v59 = vand.u32 31, %v472_v41  ;;  %v368_v60 = vsel %vm367_vm13, %v366_v57, 0  ;;  %v404_v57 = vshll.u32 %v364_v0, 8 }
 0x1c9   :  { %v1624_v63 = vshrl.u32 %v368_v60, 5  ;;  %v370_v23 = vand.u32 31, %v368_v60  ;;  %vm358_vm13 = vcmp.lt.s32.totalorder %v1611_v40, 0 }
 0x1ca   :  { %v475_v1 = vsub.s32 32, %v474_v59  ;;  %v477_v2 = vshll.u32 %v1420_v52, %v474_v59  ;;  %v480_v3 = vshll.u32 %v1421_v54, %v474_v59  ;;  %v483_v4 = vshll.u32 %v1422_v56, %v474_v59 }
 0x1cb   :  { %v486_v6 = vshll.u32 %v1417_v42, %v474_v59  ;;  %v489_v7 = vshll.u32 %v1418_v44, %v474_v59  ;;  %vm492_vm14 = vcmp.lt.s32.totalorder %v473_v58, 1  ;;  %vm493_vm15 = vcmp.lt.s32.totalorder %v473_v58, 2 }
 0x1cc   :  { %v478_v8 = vshrl.u32 %v1421_v54, %v475_v1  ;;  %v481_v9 = vshrl.u32 %v1422_v56, %v475_v1  ;;  %v484_v10 = vshrl.u32 %v1417_v42, %v475_v1  ;;  %v476_v11 = vshrl.u32 %v1420_v52, %v475_v1 }
 0x1cd   :  { %v487_v12 = vshrl.u32 %v1418_v44, %v475_v1  ;;  %v490_v5 = vshrl.u32 %v1419_v48, %v475_v1  ;;  %v371_v15 = vsub.s32 32, %v370_v23  ;;  %vm494_vm1 = vcmp.lt.s32.totalorder %v473_v58, 3 }
 0x1ce   :  { %v479_v62 = vor.u32 %v478_v8, %v477_v2  ;;  %v482_v13 = vor.u32 %v481_v9, %v480_v3  ;;  %v485_v14 = vor.u32 %v484_v10, %v483_v4  ;;  %vm495_vm2 = vcmp.lt.s32.totalorder %v473_v58, 4 }
 0x1cf   :  { %v488_v17 = vor.u32 %v487_v12, %v486_v6  ;;  %v491_v18 = vor.u32 %v490_v5, %v489_v7  ;;  %v373_v29 = vshll.u32 %v1420_v52, %v370_v23  ;;  %v374_v33 = vshrl.u32 %v1421_v54, %v371_v15 }
 0x1d0   :  { %v496_v30 = vsel %vm492_vm14, %v476_v11, %v479_v62  ;;  %v497_v20 = vsel %vm495_vm2, %v485_v14, 2102212464  ;;  %v500_v16 = vsel %vm492_vm14, %v479_v62, %v482_v13  ;;  %v504_v21 = vsel %vm492_vm14, %v482_v13, %v485_v14 }
 0x1d1   :  { %v498_v22 = vsel %vm494_vm1, %v482_v13, %v497_v20  ;;  %v501_v24 = vsel %vm495_vm2, %v488_v17, 920167782  ;;  %v505_v28 = vsel %vm495_vm2, %v491_v18, 1326507024  ;;  %v376_v34 = vshll.u32 %v1421_v54, %v370_v23 }
 0x1d2   :  { %v502_v31 = vsel %vm494_vm1, %v485_v14, %v501_v24  ;;  %v506_v32 = vsel %vm494_vm1, %v488_v17, %v505_v28  ;;  %v499_v35 = vsel %vm493_vm15, %v496_v30, %v498_v22  ;;  %v377_v36 = vshrl.u32 %v1422_v56, %v371_v15 }
 0x1d3   :  { %v503_v19 = vsel %vm493_vm15, %v500_v16, %v502_v31  ;;  %v507_v26 = vsel %vm493_vm15, %v504_v21, %v506_v32  ;;  %v375_v49 = vor.u32 %v374_v33, %v373_v29  ;;  %v379_v50 = vshll.u32 %v1422_v56, %v370_v23 }
 0x1d4   :  { %v1647_v39 = vmul.u32.u64.low %v1621_v61, %v507_v26  ;;  %v1648_v45 = vmul.u32.u64.high %v1621_v61, %v507_v26, %v1647_v39  ;;  %v1651_v47 = vmul.u32.u64.low %v1621_v61, %v503_v19  ;;  %v1652_v37 = vmul.u32.u64.high %v1621_v61, %v503_v19, %v1651_v47 }
 0x1d5   :  { %v378_v27 = vor.u32 %v377_v36, %v376_v34  ;;  %v380_v53 = vshrl.u32 %v1417_v42, %v371_v15  ;;  %v382_v51 = vshll.u32 %v1417_v42, %v370_v23  ;;  %v383_v46 = vshrl.u32 %v1418_v44, %v371_v15 }
 0x1d6   :  { %v386_v55 = vshrl.u32 %v1419_v48, %v371_v15  ;;  %v515_v41 = vmul.u32 %v1621_v61, %v499_v35  ;;  %v372_v58 = vshrl.u32 %v1420_v52, %v371_v15  ;;  %v385_v60 = vshll.u32 %v1418_v44, %v370_v23 }
 0x1d7   :  { %v381_v59 = vor.u32 %v380_v53, %v379_v50  ;;  %vm517_vm3 = vc.u32 %v1648_v45, %v1651_v47  ;;  %v518_v1 = vadd.s32 1, %v1652_v37  ;;  %v384_v2 = vor.u32 %v383_v46, %v382_v51 }
 0x1d8   :  { %vm388_vm4 = vcmp.lt.s32.totalorder %v1624_v63, 1  ;;  %v387_v3 = vor.u32 %v386_v55, %v385_v60  ;;  %vm390_vm5 = vcmp.lt.s32.totalorder %v1624_v63, 3  ;;  %vm391_vm6 = vcmp.lt.s32.totalorder %v1624_v63, 4 }
 0x1d9   :  { %v396_v0 = vsel %vm388_vm4, %v375_v49, %v378_v27  ;;  %v519_v61 = vsel %vm517_vm3, %v518_v1, %v1652_v37  ;;  %v393_v4 = vsel %vm391_vm6, %v381_v59, 2102212464  ;;  %v397_v6 = vsel %vm391_vm6, %v384_v2, 920167782 }
 0x1da   :  { %v400_v7 = vsel %vm388_vm4, %v378_v27, %v381_v59  ;;  %v520_v8 = vadd.s32 %v519_v61, %v515_v41  ;;  %vm389_vm7 = vcmp.lt.s32.totalorder %v1624_v63, 2  ;;  %v398_v23 = vsel %vm390_vm5, %v381_v59, %v397_v6 }
 0x1db   :  { %v401_v9 = vsel %vm391_vm6, %v387_v3, 1326507024  ;;  %v392_v10 = vsel %vm388_vm4, %v372_v58, %v375_v49  ;;  %v394_v11 = vsel %vm390_vm5, %v378_v27, %v393_v4  ;;  %v399_v12 = vsel %vm389_vm7, %v396_v0, %v398_v23 }
 0x1dc   :  { %v402_v5 = vsel %vm390_vm5, %v384_v2, %v401_v9  ;;  %v521_v62 = vadd.s32 536870912, %v520_v8  ;;  %v1669_v14 = vmul.u32.u64.low %v404_v57, %v399_v12  ;;  %v1670_v15 = vmul.u32.u64.high %v404_v57, %v399_v12, %v1669_v14 }
 0x1dd   :  { %v403_v13 = vsel %vm389_vm7, %v400_v7, %v402_v5  ;;  %v395_v20 = vsel %vm389_vm7, %v392_v10, %v394_v11  ;;  %v516_v37 = vadd.s32 %v1651_v47, %v1648_v45  ;;  %vm357_vm14 = vcmp.le.f32.partialorder %v356_v25, 0.7853982 }
 0x1de   :  { %v1672_v17 = vmul.u32.u64.low %v404_v57, %v403_v13  ;;  %v1673_v18 = vmul.u32.u64.high %v404_v57, %v403_v13, %v1672_v17  ;;  %v522_v30 = vshrl.u32 %v521_v62, 30  ;;  %v414_v21 = vadd.s32 1, %v1670_v15 }
 0x1df   :  { %v411_v63 = vmul.u32 %v404_v57, %v395_v20  ;;  %vm552_vm3 = vweird.f32 %v1609_v38  ;;  %vm448_vm7 = vweird.f32 %v1611_v40 }
 0x1e0   :  { %v523_v16 = vshll.u32 %v522_v30, 30  ;;  %vm413_vm8 = vc.u32 %v1673_v18, %v1669_v14  ;;  %v412_v3 = vadd.s32 %v1669_v14, %v1673_v18  ;;  %v546_v47 = vsub.s32 4, %v522_v30 }
 0x1e1   :  { %v415_v24 = vsel %vm413_vm8, %v414_v21, %v1670_v15 }
 0x1e2   :  { %v524_v22 = vsub.s32 %v520_v8, %v523_v16  ;;  %v416_v28 = vadd.s32 %v415_v24, %v411_v63  ;;  %v547_v11 = vsel %vm462_vm11, %v546_v47, %v522_v30 }
 0x1e3   :  { %v549_v14 = vsel %vm461_vm12, 0, %v547_v11 }
 0x1e4   :  { %v526_v29 = vsub.s32 0, %v524_v22  ;;  %v417_v31 = vadd.s32 536870912, %v416_v28  ;;  %v553_v18 = vadd.s32 3, %v549_v14 }
 0x1e6   :  { %v1239_v32 = vmin.u32 %v526_v29, %v524_v22  ;;  %v418_v33 = vshrl.u32 %v417_v31, 30  ;;  %v554_v21 = vand.u32 3, %v553_v18 }
 0x1e8   :  { %v528_v34 = vclz %v1239_v32  ;;  %v419_v35 = vshll.u32 %v418_v33, 30  ;;  %v442_v17 = vsub.s32 4, %v418_v33  ;;  %vm559_vm15 = vcmp.eq.s32.totalorder %v554_v21, 2 }
 0x1e9   :  { %vm556_vm1 = vcmp.eq.s32.totalorder %v554_v21, 0  ;;  %vm555_vm2 = vcmp.lt.s32.totalorder %v554_v21, 2 }
 0x1ea   :  { %v1240_v19 = vadd.s32 4294967294, %v528_v34  ;;  %v420_v26 = vsub.s32 %v416_v28, %v419_v35  ;;  %v443_v43 = vsel %vm358_vm13, %v442_v17, %v418_v33 }
 0x1ec   :  { %vm1241_vm9 = vcmp.lt.s32.totalorder %v1240_v19, 0  ;;  %v422_v39 = vsub.s32 0, %v420_v26 }
 0x1ed   :  { %v531_v36 = vsel %vm1241_vm9, 0, %v1240_v19 }
 0x1ee   :  { %v532_v49 = vsub.s32 32, %v531_v36  ;;  %v536_v27 = vsub.s32 4294967266, %v531_v36  ;;  %v1235_v50 = vmin.u32 %v422_v39, %v420_v26  ;;  %v533_v53 = vshll.u32 %v524_v22, %v531_v36 }
 0x1ef   :  { %v445_v22 = vsel %vm357_vm14, 0, %v443_v43 }
 0x1f0   :  { %v534_v51 = vshrl.u32 %v516_v37, %v532_v49  ;;  %v537_v46 = vadd.s32 127, %v536_v27  ;;  %v424_v55 = vclz %v1235_v50  ;;  %v449_v31 = vadd.s32 3, %v445_v22 }
 0x1f2   :  { %v535_v57 = vor.u32 %v534_v51, %v533_v53  ;;  %v538_v41 = vshll.u32 %v537_v46, 23  ;;  %v1236_v58 = vadd.s32 4294967294, %v424_v55  ;;  %v450_v35 = vand.u32 3, %v449_v31  ;;  %v1256_v51 = vld [vmem:[%s1877_s1 + $0x30] sm:$0xff]  ;;  %v578_v46 = vpop.permute.xlu1 %577 }
 0x1f3   :  { %1303 = vmatprep.mubr.msk.f32.mxu0 %vm274_vm0, %v1256_v51 }
 0x1f4   :  { %v539_v59 = vor.u32 4788187, %v538_v41  ;;  %vm1237_vm10 = vcmp.lt.s32.totalorder %v1236_v58, 0  ;;  %v542_v1 = vcvt.s32.f32 %v535_v57  ;;  %vm455_vm4 = vcmp.eq.s32.totalorder %v450_v35, 2 }
 0x1f5   :  { %v427_v2 = vsel %vm1237_vm10, 0, %v1236_v58  ;;  %vm452_vm5 = vcmp.eq.s32.totalorder %v450_v35, 0  ;;  %vm451_vm6 = vcmp.lt.s32.totalorder %v450_v35, 2 }
 0x1f6   :  { %v540_v60 = vand.u32 2147483647, %v539_v59  ;;  %v428_v0 = vsub.s32 32, %v427_v2  ;;  %v432_v61 = vsub.s32 4294967266, %v427_v2  ;;  %v429_v4 = vshll.u32 %v420_v26, %v427_v2 }
 0x1f8   :  { %v543_v45 = vmul.f32 %v542_v1, %v540_v60  ;;  %v430_v6 = vshrl.u32 %v412_v3, %v428_v0  ;;  %v433_v7 = vadd.s32 127, %v432_v61 }
 0x1fa   :  { %v544_v8 = vxor.u32 2147483648, %v543_v45  ;;  %v431_v23 = vor.u32 %v430_v6, %v429_v4  ;;  %v434_v9 = vshll.u32 %v433_v7, 23 }
 0x1fc   :  { %v545_v10 = vsel %vm462_vm11, %v544_v8, %v543_v45  ;;  %v435_v12 = vor.u32 4788187, %v434_v9  ;;  %v438_v13 = vcvt.s32.f32 %v431_v23 }
 0x1fd   :  { %v548_v5 = vsel %vm461_vm12, %v1609_v38, %v545_v10  ;;  %v1243_v38 = vld [vmem:[%s1877_s1 + $0x28] sm:$0xff] }
 0x1fe   :  { %1368 = vcosq.f32 %v548_v5  ;;  %v436_v62 = vand.u32 2147483647, %v435_v12 }
 0x1ff   :  { %1370 = vsinq.f32 %v548_v5 }
 0x200   :  { %v439_v15 = vmul.f32 %v438_v13, %v436_v62 }
 0x202   :  { %v440_v20 = vxor.u32 2147483648, %v439_v15 }
 0x204   :  { %v441_v16 = vsel %vm358_vm13, %v440_v20, %v439_v15 }
 0x205   :  { %v444_v30 = vsel %vm357_vm14, %v1611_v40, %v441_v16  ;;  %v573_v40 = vpop.permute.xlu0 %572 }
 0x206   :  { %1372 = vcosq.f32 %v444_v30 }
 0x207   :  { %1374 = vsinq.f32 %v444_v30 }
 0x208   :  { %v1369_v63 = vpop.eup %1368 }
 0x209   :  { %v1371_v24 = vpop.eup %1370  ;;  %v560_v28 = vxor.u32 2147483648, %v1369_v63 }
 0x20a   :  { %v557_v29 = vxor.u32 2147483648, %v1371_v24 }
 0x20b   :  { %v561_v32 = vsel %vm559_vm15, %v560_v28, %v1371_v24 }
 0x20c   :  { %v558_v34 = vsel %vm556_vm1, %v1369_v63, %v557_v29 }
 0x20d   :  { %v562_v25 = vsel %vm555_vm2, %v558_v34, %v561_v32 }
 0x20e   :  { %v563_v33 = vsel %vm552_vm3, nan, %v562_v25 }
 0x210   :  { %v1373_v19 = vpop.eup %1372 }
 0x211   :  { %v1375_v26 = vpop.eup %1374  ;;  %v456_v36 = vxor.u32 2147483648, %v1373_v19 }
 0x212   :  { %v453_v39 = vxor.u32 2147483648, %v1375_v26 }
 0x213   :  { %v457_v37 = vsel %vm455_vm4, %v456_v36, %v1375_v26 }
 0x214   :  { %v454_v49 = vsel %vm452_vm5, %v1373_v19, %v453_v39 }
 0x215   :  { %v458_v27 = vsel %vm451_vm6, %v454_v49, %v457_v37 }
 0x216   :  { %v459_v50 = vsel %vm448_vm7, nan, %v458_v27 }
 0x217   :  { %v1310_v53 = vpack.c.bf16 %v563_v33, %v459_v50 }
 0x219   :  { %1311 = vmatprep.subr.bf16.mxu1 %v1310_v53 }
 0x21a   :  { %1313 = vmatpush3.bf16.msra.mxu1 %v1310_v53 }
 0x21d   :  { %1297 = vmatmul.mubr.msk.f32.vlgmr.msra.gmra.mrb[0].mxu1 %vm274_vm0, %v1243_v38 }
 0x2f0   :  { %v1298_v55 = vpop.f32.mrb[0].mxu1 }
 0x2f1   :  { %v1698_v57 = vadd.f32 %v1298_v55, %v578_v46  ;;  %v652_v41 = vpop.f32.mrb[1].mxu1 }
 0x2f2   :  { %v1700_v58 = vadd.f32 %v652_v41, %v573_v40 }
 0x2f3   :  { %v765_v59 = vand.u32 2147483647, %v1698_v57  ;;  %v768_v60 = vand.u32 2139095040, %v1698_v57  ;;  %vm767_vm7 = vcmp.lt.s32.totalorder %v1698_v57, 0 }
 0x2f4   :  { %v664_v1 = vand.u32 2139095040, %v1700_v58  ;;  %v661_v0 = vand.u32 2147483647, %v1700_v58 }
 0x2f5   :  { %v769_v2 = vshrl.u32 %v768_v60, 23  ;;  %v772_v3 = vand.u32 8388607, %v765_v59 }
 0x2f6   :  { %v665_v61 = vshrl.u32 %v664_v1, 23  ;;  %v668_v7 = vand.u32 8388607, %v661_v0 }
 0x2f7   :  { %v1252_v45 = vadd.s32 4294967169, %v769_v2  ;;  %v773_v6 = vor.u32 8388608, %v772_v3 }
 0x2f8   :  { %v1248_v47 = vadd.s32 4294967169, %v665_v61  ;;  %v669_v5 = vor.u32 8388608, %v668_v7 }
 0x2f9   :  { %v775_v4 = vadd.s32 1, %v1252_v45  ;;  %v1710_v12 = vshll.u32 %v773_v6, 8 }
 0x2fa   :  { %v671_v8 = vadd.s32 1, %v1248_v47 }
 0x2fb   :  { %vm776_vm8 = vcmp.gt.s32.totalorder %v775_v4, 0 }
 0x2fc   :  { %v777_v23 = vsel %vm776_vm8, %v775_v4, 0  ;;  %vm672_vm9 = vcmp.gt.s32.totalorder %v671_v8, 0  ;;  %vm766_vm8 = vcmp.le.f32.partialorder %v765_v59, 0.7853982 }
 0x2fd   :  { %v778_v9 = vshrl.u32 %v777_v23, 5  ;;  %v779_v10 = vand.u32 31, %v777_v23  ;;  %v673_v11 = vsel %vm672_vm9, %v671_v8, 0  ;;  %v709_v8 = vshll.u32 %v669_v5, 8 }
 0x2fe   :  { %v1713_v14 = vshrl.u32 %v673_v11, 5  ;;  %v675_v15 = vand.u32 31, %v673_v11  ;;  %vm663_vm9 = vcmp.lt.s32.totalorder %v1700_v58, 0 }
 0x2ff   :  { %v780_v62 = vsub.s32 32, %v779_v10  ;;  %v782_v13 = vshll.u32 %v1420_v52, %v779_v10  ;;  %v785_v17 = vshll.u32 %v1421_v54, %v779_v10  ;;  %v788_v18 = vshll.u32 %v1422_v56, %v779_v10 }
 0x300   :  { %v791_v20 = vshll.u32 %v1417_v42, %v779_v10  ;;  %v794_v16 = vshll.u32 %v1418_v44, %v779_v10  ;;  %vm797_vm10 = vcmp.lt.s32.totalorder %v778_v9, 1  ;;  %vm798_vm11 = vcmp.lt.s32.totalorder %v778_v9, 2 }
 0x301   :  { %v783_v43 = vshrl.u32 %v1421_v54, %v780_v62  ;;  %v786_v30 = vshrl.u32 %v1422_v56, %v780_v62  ;;  %v789_v21 = vshrl.u32 %v1417_v42, %v780_v62  ;;  %v781_v63 = vshrl.u32 %v1420_v52, %v780_v62 }
 0x302   :  { %v792_v22 = vshrl.u32 %v1418_v44, %v780_v62  ;;  %v795_v24 = vshrl.u32 %v1419_v48, %v780_v62  ;;  %v676_v32 = vsub.s32 32, %v675_v15  ;;  %vm799_vm12 = vcmp.lt.s32.totalorder %v778_v9, 3 }
 0x303   :  { %v784_v28 = vor.u32 %v783_v43, %v782_v13  ;;  %v787_v29 = vor.u32 %v786_v30, %v785_v17  ;;  %v790_v31 = vor.u32 %v789_v21, %v788_v18  ;;  %vm800_vm13 = vcmp.lt.s32.totalorder %v778_v9, 4 }
 0x304   :  { %v793_v34 = vor.u32 %v792_v22, %v791_v20  ;;  %v796_v25 = vor.u32 %v795_v24, %v794_v16  ;;  %v678_v49 = vshll.u32 %v1420_v52, %v675_v15  ;;  %v679_v53 = vshrl.u32 %v1421_v54, %v676_v32 }
 0x305   :  { %v801_v33 = vsel %vm797_vm10, %v781_v63, %v784_v28  ;;  %v802_v35 = vsel %vm800_vm13, %v790_v31, 2102212464  ;;  %v805_v19 = vsel %vm797_vm10, %v784_v28, %v787_v29  ;;  %v809_v26 = vsel %vm797_vm10, %v787_v29, %v790_v31 }
 0x306   :  { %v803_v36 = vsel %vm799_vm12, %v787_v29, %v802_v35  ;;  %v806_v39 = vsel %vm800_vm13, %v793_v34, 920167782  ;;  %v810_v37 = vsel %vm800_vm13, %v796_v25, 1326507024  ;;  %v681_v38 = vshll.u32 %v1421_v54, %v675_v15 }
 0x307   :  { %v807_v27 = vsel %vm799_vm12, %v790_v31, %v806_v39  ;;  %v811_v50 = vsel %vm799_vm12, %v793_v34, %v810_v37  ;;  %v804_v51 = vsel %vm798_vm11, %v801_v33, %v803_v36  ;;  %v682_v40 = vshrl.u32 %v1422_v56, %v676_v32 }
 0x308   :  { %v808_v46 = vsel %vm798_vm11, %v805_v19, %v807_v27  ;;  %v812_v55 = vsel %vm798_vm11, %v809_v26, %v811_v50  ;;  %v680_v3 = vor.u32 %v679_v53, %v678_v49  ;;  %v684_v45 = vshll.u32 %v1422_v56, %v675_v15 }
 0x309   :  { %v1736_v41 = vmul.u32.u64.low %v1710_v12, %v812_v55  ;;  %v1737_v60 = vmul.u32.u64.high %v1710_v12, %v812_v55, %v1736_v41  ;;  %v1740_v1 = vmul.u32.u64.low %v1710_v12, %v808_v46  ;;  %v1741_v2 = vmul.u32.u64.high %v1710_v12, %v808_v46, %v1740_v1 }
 0x30a   :  { %v683_v61 = vor.u32 %v682_v40, %v681_v38  ;;  %v685_v47 = vshrl.u32 %v1417_v42, %v676_v32  ;;  %v687_v4 = vshll.u32 %v1417_v42, %v675_v15  ;;  %v688_v6 = vshrl.u32 %v1418_v44, %v676_v32 }
 0x30b   :  { %v691_v7 = vshrl.u32 %v1419_v48, %v676_v32  ;;  %v820_v23 = vmul.u32 %v1710_v12, %v804_v51  ;;  %v677_v9 = vshrl.u32 %v1420_v52, %v676_v32  ;;  %v690_v11 = vshll.u32 %v1418_v44, %v675_v15 }
 0x30c   :  { %v686_v10 = vor.u32 %v685_v47, %v684_v45  ;;  %vm822_vm14 = vc.u32 %v1737_v60, %v1740_v1  ;;  %v823_v62 = vadd.s32 1, %v1741_v2  ;;  %v689_v13 = vor.u32 %v688_v6, %v687_v4 }
 0x30d   :  { %vm693_vm15 = vcmp.lt.s32.totalorder %v1713_v14, 1  ;;  %v692_v17 = vor.u32 %v691_v7, %v690_v11  ;;  %vm695_vm1 = vcmp.lt.s32.totalorder %v1713_v14, 3  ;;  %vm696_vm2 = vcmp.lt.s32.totalorder %v1713_v14, 4 }
 0x30e   :  { %v701_v5 = vsel %vm693_vm15, %v680_v3, %v683_v61  ;;  %v824_v12 = vsel %vm822_vm14, %v823_v62, %v1741_v2  ;;  %v698_v18 = vsel %vm696_vm2, %v686_v10, 2102212464  ;;  %v702_v20 = vsel %vm696_vm2, %v689_v13, 920167782 }
 0x30f   :  { %v705_v16 = vsel %vm693_vm15, %v683_v61, %v686_v10  ;;  %v825_v43 = vadd.s32 %v824_v12, %v820_v23  ;;  %vm694_vm3 = vcmp.lt.s32.totalorder %v1713_v14, 2  ;;  %v703_v15 = vsel %vm695_vm1, %v686_v10, %v702_v20 }
 0x310   :  { %v706_v30 = vsel %vm696_vm2, %v692_v17, 1326507024  ;;  %v697_v21 = vsel %vm693_vm15, %v677_v9, %v680_v3  ;;  %v699_v63 = vsel %vm695_vm1, %v683_v61, %v698_v18  ;;  %v704_v22 = vsel %vm694_vm3, %v701_v5, %v703_v15 }
 0x311   :  { %v707_v24 = vsel %vm695_vm1, %v689_v13, %v706_v30  ;;  %v826_v28 = vadd.s32 536870912, %v825_v43  ;;  %v1758_v31 = vmul.u32.u64.low %v709_v8, %v704_v22  ;;  %v1759_v32 = vmul.u32.u64.high %v709_v8, %v704_v22, %v1758_v31 }
 0x312   :  { %v708_v29 = vsel %vm694_vm3, %v705_v16, %v707_v24  ;;  %v700_v35 = vsel %vm694_vm3, %v697_v21, %v699_v63  ;;  %v821_v2 = vadd.s32 %v1740_v1, %v1737_v60  ;;  %vm662_vm10 = vcmp.le.f32.partialorder %v661_v0, 0.7853982 }
 0x313   :  { %v1761_v34 = vmul.u32.u64.low %v709_v8, %v708_v29  ;;  %v1762_v25 = vmul.u32.u64.high %v709_v8, %v708_v29, %v1761_v34  ;;  %v827_v33 = vshrl.u32 %v826_v28, 30  ;;  %v719_v26 = vadd.s32 1, %v1759_v32 }
 0x314   :  { %v716_v14 = vmul.u32 %v709_v8, %v700_v35  ;;  %vm857_vm14 = vweird.f32 %v1698_v57  ;;  %vm753_vm3 = vweird.f32 %v1700_v58 }
 0x315   :  { %v828_v19 = vshll.u32 %v827_v33, 30  ;;  %vm718_vm4 = vc.u32 %v1762_v25, %v1758_v31  ;;  %v717_v17 = vadd.s32 %v1758_v31, %v1762_v25  ;;  %v851_v1 = vsub.s32 4, %v827_v33 }
 0x316   :  { %v720_v39 = vsel %vm718_vm4, %v719_v26, %v1759_v32 }
 0x317   :  { %v829_v36 = vsub.s32 %v825_v43, %v828_v19  ;;  %v721_v37 = vadd.s32 %v720_v39, %v716_v14  ;;  %v852_v63 = vsel %vm767_vm7, %v851_v1, %v827_v33 }
 0x318   :  { %v854_v31 = vsel %vm766_vm8, 0, %v852_v63 }
 0x319   :  { %v831_v49 = vsub.s32 0, %v829_v36  ;;  %v722_v27 = vadd.s32 536870912, %v721_v37  ;;  %v858_v25 = vadd.s32 3, %v854_v31 }
 0x31b   :  { %v1253_v50 = vmin.u32 %v831_v49, %v829_v36  ;;  %v723_v53 = vshrl.u32 %v722_v27, 30  ;;  %v859_v26 = vand.u32 3, %v858_v25 }
 0x31d   :  { %v833_v38 = vclz %v1253_v50  ;;  %v724_v51 = vshll.u32 %v723_v53, 30  ;;  %v747_v34 = vsub.s32 4, %v723_v53  ;;  %vm864_vm11 = vcmp.eq.s32.totalorder %v859_v26, 2 }
 0x31e   :  { %vm861_vm12 = vcmp.eq.s32.totalorder %v859_v26, 0  ;;  %vm860_vm13 = vcmp.lt.s32.totalorder %v859_v26, 2 }
 0x31f   :  { %v1254_v46 = vadd.s32 4294967294, %v833_v38  ;;  %v725_v55 = vsub.s32 %v721_v37, %v724_v51  ;;  %v748_v19 = vsel %vm663_vm9, %v747_v34, %v723_v53 }
 0x321   :  { %vm1255_vm5 = vcmp.lt.s32.totalorder %v1254_v46, 0  ;;  %v727_v41 = vsub.s32 0, %v725_v55 }
 0x322   :  { %v836_v40 = vsel %vm1255_vm5, 0, %v1254_v46 }
 0x323   :  { %v837_v3 = vsub.s32 32, %v836_v40  ;;  %v841_v61 = vsub.s32 4294967266, %v836_v40  ;;  %v1249_v45 = vmin.u32 %v727_v41, %v725_v55  ;;  %v838_v47 = vshll.u32 %v829_v36, %v836_v40 }
 0x324   :  { %v750_v36 = vsel %vm662_vm10, 0, %v748_v19 }
 0x325   :  { %v839_v4 = vshrl.u32 %v821_v2, %v837_v3  ;;  %v842_v6 = vadd.s32 127, %v841_v61  ;;  %v729_v7 = vclz %v1249_v45  ;;  %v754_v27 = vadd.s32 3, %v750_v36 }
 0x327   :  { %v840_v8 = vor.u32 %v839_v4, %v838_v47  ;;  %v843_v23 = vshll.u32 %v842_v6, 23  ;;  %v1250_v9 = vadd.s32 4294967294, %v729_v7  ;;  %v755_v51 = vand.u32 3, %v754_v27  ;;  %v883_v4 = vpop.permute.xlu1 %882  ;;  %v878_v7 = vpop.permute.xlu0 %877 }
 0x329   :  { %v844_v10 = vor.u32 4788187, %v843_v23  ;;  %vm1251_vm6 = vcmp.lt.s32.totalorder %v1250_v9, 0  ;;  %v847_v62 = vcvt.s32.f32 %v840_v8  ;;  %vm760_vm15 = vcmp.eq.s32.totalorder %v755_v51, 2 }
 0x32a   :  { %v732_v13 = vsel %vm1251_vm6, 0, %v1250_v9  ;;  %vm757_vm1 = vcmp.eq.s32.totalorder %v755_v51, 0  ;;  %vm756_vm2 = vcmp.lt.s32.totalorder %v755_v51, 2 }
 0x32b   :  { %v845_v11 = vand.u32 2147483647, %v844_v10  ;;  %v733_v5 = vsub.s32 32, %v732_v13  ;;  %v737_v12 = vsub.s32 4294967266, %v732_v13  ;;  %v734_v18 = vshll.u32 %v725_v55, %v732_v13 }
 0x32d   :  { %v848_v60 = vmul.f32 %v847_v62, %v845_v11  ;;  %v735_v20 = vshrl.u32 %v717_v17, %v733_v5  ;;  %v738_v16 = vadd.s32 127, %v737_v12 }
 0x32f   :  { %v849_v43 = vxor.u32 2147483648, %v848_v60  ;;  %v736_v15 = vor.u32 %v735_v20, %v734_v18  ;;  %v739_v30 = vshll.u32 %v738_v16, 23 }
 0x331   :  { %v850_v21 = vsel %vm767_vm7, %v849_v43, %v848_v60  ;;  %v740_v24 = vor.u32 4788187, %v739_v30  ;;  %v743_v29 = vcvt.s32.f32 %v736_v15 }
 0x332   :  { %v853_v22 = vsel %vm766_vm8, %v1698_v57, %v850_v21  ;;  %v1257_v57 = vld [vmem:[%s1877_s1 + $0x38] sm:$0xff]  ;;  %s1423_s1 = smov [#allocation2]  }
 0x333   :  { %1376 = vcosq.f32 %v853_v22  ;;  %v741_v28 = vand.u32 2147483647, %v740_v24  ;;  %s1211_s23 = sshll.u32 %s1423_s1, 4  ;;  %s1212_s23 = int_to_ptr.vmem [resolvable:$true] %s1211_s23 }
 0x334   :  { %1378 = vsinq.f32 %v853_v22  ;;  %s1392_s24 = scalar_lea.vmem %s1212_s23, 16  ;;  %s1396_s25 = scalar_lea.vmem %s1212_s23, 32 }
 0x335   :  { %v744_v32 = vmul.f32 %v743_v29, %v741_v28  ;;  %p1393_p0 = scmp.ne.s32.totalorder %s1212_s23, %s1392_s24  ;;  %p1397_p1 = scmp.lt.s32.totalorder %s1212_s23, %s1212_s23 }
 0x336   :  { %p1398_p2 = scmp.lt.s32.totalorder %s1396_s25, %s1392_s24 }
 0x337   :  { %v745_v35 = vxor.u32 2147483648, %v744_v32 }
 0x338   :  { %p1399_p3 = por %p1398_p2, %p1397_p1 }
 0x339   :  { %v746_v59 = vsel %vm663_vm9, %v745_v35, %v744_v32 }
 0x33a   :  { %v749_v33 = vsel %vm662_vm10, %v1700_v58, %v746_v59  ;;  %p1400_p4 = pnand %p1399_p3, %p1393_p0 }
 0x33b   :  { %1380 = vcosq.f32 %v749_v33 }
 0x33c   :  { %1382 = vsinq.f32 %v749_v33 }
 0x33d   :  { %v1377_v14 = vpop.eup %1376 }
 0x33e   :  { %v1379_v39 = vpop.eup %1378  ;;  %v865_v37 = vxor.u32 2147483648, %v1377_v14 }
 0x33f   :  { %v862_v49 = vxor.u32 2147483648, %v1379_v39 }
 0x340   :  { %v866_v50 = vsel %vm864_vm11, %v865_v37, %v1379_v39 }
 0x341   :  { %v863_v38 = vsel %vm861_vm12, %v1377_v14, %v862_v49 }
 0x342   :  { %v867_v0 = vsel %vm860_vm13, %v863_v38, %v866_v50 }
 0x343   :  { %v868_v53 = vsel %vm857_vm14, nan, %v867_v0 }
 0x345   :  { %v1381_v46 = vpop.eup %1380 }
 0x346   :  { %v1383_v55 = vpop.eup %1382  ;;  %v761_v40 = vxor.u32 2147483648, %v1381_v46 }
 0x347   :  { %v758_v41 = vxor.u32 2147483648, %v1383_v55 }
 0x348   :  { %v762_v2 = vsel %vm760_vm15, %v761_v40, %v1383_v55 }
 0x349   :  { %v759_v3 = vsel %vm757_vm1, %v1381_v46, %v758_v41 }
 0x34a   :  { %v763_v61 = vsel %vm756_vm2, %v759_v3, %v762_v2 }
 0x34b   :  { %v764_v45 = vsel %vm753_vm3, nan, %v763_v61 }
 0x34c   :  { %v1314_v47 = vpack.c.bf16 %v868_v53, %v764_v45 }
 0x34e   :  { %1315 = vmatprep.subr.bf16.mxu0 %v1314_v47 }
 0x34f   :  { %1317 = vmatpush3.bf16.msra.mxu0 %v1314_v47 }
 0x352   :  { %1304 = vmatmul.mubr.msk.f32.vlgmr.msra.gmra.mrb[2].mxu0 %vm274_vm0, %v1257_v57 }
 0x425   :  { %v1305_v6 = vpop.f32.mrb[2].mxu0 }
 0x426   :  { %v1783_v8 = vadd.f32 %v1305_v6, %v883_v4  ;;  %v957_v23 = vpop.f32.mrb[3].mxu0 }
 0x427   :  { %v1785_v9 = vadd.f32 %v957_v23, %v878_v7 }
 0x428   :  { %v1070_v58 = vand.u32 2147483647, %v1783_v8  ;;  %v1073_v10 = vand.u32 2139095040, %v1783_v8  ;;  %vm1072_vm2 = vcmp.lt.s32.totalorder %v1783_v8, 0 }
 0x429   :  { %v969_v11 = vand.u32 2139095040, %v1785_v9  ;;  %v966_v17 = vand.u32 2147483647, %v1785_v9 }
 0x42a   :  { %v1074_v62 = vshrl.u32 %v1073_v10, 23  ;;  %v1077_v13 = vand.u32 8388607, %v1070_v58  ;;  %vm1071_vm3 = vcmp.le.f32.partialorder %v1070_v58, 0.7853982 }
 0x42b   :  { %v970_v5 = vshrl.u32 %v969_v11, 23  ;;  %v973_v20 = vand.u32 8388607, %v966_v17 }
 0x42c   :  { %v1266_v12 = vadd.s32 4294967169, %v1074_v62  ;;  %v1078_v18 = vor.u32 8388608, %v1077_v13 }
 0x42d   :  { %v1262_v60 = vadd.s32 4294967169, %v970_v5  ;;  %v974_v22 = vor.u32 8388608, %v973_v20 }
 0x42e   :  { %v1080_v1 = vadd.s32 1, %v1266_v12  ;;  %v1795_v63 = vshll.u32 %v1078_v18, 8 }
 0x42f   :  { %v976_v16 = vadd.s32 1, %v1262_v60  ;;  %v1014_v20 = vshll.u32 %v974_v22, 8 }
 0x430   :  { %vm1081_vm0 = vcmp.gt.s32.totalorder %v1080_v1, 0 }
 0x431   :  { %v1082_v43 = vsel %vm1081_vm0, %v1080_v1, 0  ;;  %vm977_vm4 = vcmp.gt.s32.totalorder %v976_v16, 0  ;;  %vm968_vm0 = vcmp.lt.s32.totalorder %v1785_v9, 0 }
 0x432   :  { %v1083_v15 = vshrl.u32 %v1082_v43, 5  ;;  %v1084_v30 = vand.u32 31, %v1082_v43  ;;  %v978_v21 = vsel %vm977_vm4, %v976_v16, 0  ;;  %vm967_vm4 = vcmp.le.f32.partialorder %v966_v17, 0.7853982 }
 0x433   :  { %v1798_v29 = vshrl.u32 %v978_v21, 5  ;;  %v980_v31 = vand.u32 31, %v978_v21 }
 0x434   :  { %v1085_v24 = vsub.s32 32, %v1084_v30  ;;  %v1087_v28 = vshll.u32 %v1420_v52, %v1084_v30  ;;  %v1090_v32 = vshll.u32 %v1421_v54, %v1084_v30  ;;  %v1093_v34 = vshll.u32 %v1422_v56, %v1084_v30 }
 0x435   :  { %v1096_v25 = vshll.u32 %v1417_v42, %v1084_v30  ;;  %v1099_v35 = vshll.u32 %v1418_v44, %v1084_v30  ;;  %vm1102_vm5 = vcmp.lt.s32.totalorder %v1083_v15, 1  ;;  %vm1103_vm6 = vcmp.lt.s32.totalorder %v1083_v15, 2 }
 0x436   :  { %v1088_v59 = vshrl.u32 %v1421_v54, %v1085_v24  ;;  %v1091_v19 = vshrl.u32 %v1422_v56, %v1085_v24  ;;  %v1094_v33 = vshrl.u32 %v1417_v42, %v1085_v24  ;;  %v1086_v26 = vshrl.u32 %v1420_v52, %v1085_v24 }
 0x437   :  { %v1097_v14 = vshrl.u32 %v1418_v44, %v1085_v24  ;;  %v1100_v36 = vshrl.u32 %v1419_v48, %v1085_v24  ;;  %v981_v27 = vsub.s32 32, %v980_v31  ;;  %vm1104_vm7 = vcmp.lt.s32.totalorder %v1083_v15, 3 }
 0x438   :  { %v1089_v39 = vor.u32 %v1088_v59, %v1087_v28  ;;  %v1092_v37 = vor.u32 %v1091_v19, %v1090_v32  ;;  %v1095_v49 = vor.u32 %v1094_v33, %v1093_v34  ;;  %vm1105_vm8 = vcmp.lt.s32.totalorder %v1083_v15, 4 }
 0x439   :  { %v1098_v50 = vor.u32 %v1097_v14, %v1096_v25  ;;  %v1101_v38 = vor.u32 %v1100_v36, %v1099_v35  ;;  %v983_v2 = vshll.u32 %v1420_v52, %v980_v31  ;;  %v984_v45 = vshrl.u32 %v1421_v54, %v981_v27 }
 0x43a   :  { %v1106_v0 = vsel %vm1102_vm5, %v1086_v26, %v1089_v39  ;;  %v1107_v53 = vsel %vm1105_vm8, %v1095_v49, 2102212464  ;;  %v1110_v51 = vsel %vm1102_vm5, %v1089_v39, %v1092_v37  ;;  %v1114_v46 = vsel %vm1102_vm5, %v1092_v37, %v1095_v49 }
 0x43b   :  { %v1108_v55 = vsel %vm1104_vm7, %v1092_v37, %v1107_v53  ;;  %v1111_v40 = vsel %vm1105_vm8, %v1098_v50, 920167782  ;;  %v1115_v41 = vsel %vm1105_vm8, %v1101_v38, 1326507024  ;;  %v986_v47 = vshll.u32 %v1421_v54, %v980_v31 }
 0x43c   :  { %v1112_v3 = vsel %vm1104_vm7, %v1095_v49, %v1111_v40  ;;  %v1116_v61 = vsel %vm1104_vm7, %v1098_v50, %v1115_v41  ;;  %v1109_v57 = vsel %vm1103_vm6, %v1106_v0, %v1108_v55  ;;  %v987_v7 = vshrl.u32 %v1422_v56, %v981_v27 }
 0x43d   :  { %v1113_v4 = vsel %vm1103_vm6, %v1110_v51, %v1112_v3  ;;  %v1117_v6 = vsel %vm1103_vm6, %v1114_v46, %v1116_v61  ;;  %v985_v13 = vor.u32 %v984_v45, %v983_v2  ;;  %v989_v54 = vshll.u32 %v1422_v56, %v980_v31 }
 0x43e   :  { %v1821_v23 = vmul.u32.u64.low %v1795_v63, %v1117_v6  ;;  %v1822_v10 = vmul.u32.u64.high %v1795_v63, %v1117_v6, %v1821_v23  ;;  %v1825_v11 = vmul.u32.u64.low %v1795_v63, %v1113_v4  ;;  %v1826_v62 = vmul.u32.u64.high %v1795_v63, %v1113_v4, %v1825_v11 }
 0x43f   :  { %v988_v5 = vor.u32 %v987_v7, %v986_v47  ;;  %v990_v12 = vshrl.u32 %v1417_v42, %v981_v27  ;;  %v992_v60 = vshll.u32 %v1417_v42, %v980_v31  ;;  %v993_v1 = vshrl.u32 %v1418_v44, %v981_v27 }
 0x440   :  { %v996_v18 = vshrl.u32 %v1419_v48, %v981_v27  ;;  %v1125_v16 = vmul.u32 %v1795_v63, %v1109_v57  ;;  %v982_v43 = vshrl.u32 %v1420_v52, %v981_v27  ;;  %v995_v30 = vshll.u32 %v1418_v44, %v980_v31 }
 0x441   :  { %v991_v15 = vor.u32 %v990_v12, %v989_v54  ;;  %vm1127_vm9 = vc.u32 %v1822_v10, %v1825_v11  ;;  %v1128_v56 = vadd.s32 1, %v1826_v62  ;;  %v994_v21 = vor.u32 %v993_v1, %v992_v60 }
 0x442   :  { %vm998_vm10 = vcmp.lt.s32.totalorder %v1798_v29, 1  ;;  %v997_v42 = vor.u32 %v996_v18, %v995_v30  ;;  %vm1000_vm11 = vcmp.lt.s32.totalorder %v1798_v29, 3  ;;  %vm1001_vm12 = vcmp.lt.s32.totalorder %v1798_v29, 4 }
 0x443   :  { %v1006_v48 = vsel %vm998_vm10, %v985_v13, %v988_v5  ;;  %v1129_v63 = vsel %vm1127_vm9, %v1128_v56, %v1826_v62  ;;  %v1003_v22 = vsel %vm1001_vm12, %v991_v15, 2102212464  ;;  %v1007_v52 = vsel %vm1001_vm12, %v994_v21, 920167782 }
 0x444   :  { %v1010_v24 = vsel %vm998_vm10, %v988_v5, %v991_v15  ;;  %v1130_v28 = vadd.s32 %v1129_v63, %v1125_v16  ;;  %vm999_vm13 = vcmp.lt.s32.totalorder %v1798_v29, 2  ;;  %v1008_v44 = vsel %vm1000_vm11, %v991_v15, %v1007_v52 }
 0x445   :  { %v1011_v31 = vsel %vm1001_vm12, %v997_v42, 1326507024  ;;  %v1002_v32 = vsel %vm998_vm10, %v982_v43, %v985_v13  ;;  %v1004_v34 = vsel %vm1000_vm11, %v988_v5, %v1003_v22  ;;  %v1009_v25 = vsel %vm999_vm13, %v1006_v48, %v1008_v44 }
 0x446   :  { %v1012_v35 = vsel %vm1000_vm11, %v994_v21, %v1011_v31  ;;  %v1131_v59 = vadd.s32 536870912, %v1130_v28  ;;  %v1843_v33 = vmul.u32.u64.low %v1014_v20, %v1009_v25  ;;  %v1844_v26 = vmul.u32.u64.high %v1014_v20, %v1009_v25, %v1843_v33 }
 0x447   :  { %v1013_v19 = vsel %vm999_vm13, %v1010_v24, %v1012_v35  ;;  %v1005_v37 = vsel %vm999_vm13, %v1002_v32, %v1004_v34  ;;  %v1126_v47 = vadd.s32 %v1825_v11, %v1822_v10  ;;  %vm1162_vm8 = vweird.f32 %v1783_v8 }
 0x448   :  { %v1846_v14 = vmul.u32.u64.low %v1014_v20, %v1013_v19  ;;  %v1847_v36 = vmul.u32.u64.high %v1014_v20, %v1013_v19, %v1846_v14  ;;  %v1132_v39 = vshrl.u32 %v1131_v59, 30  ;;  %v1024_v27 = vadd.s32 1, %v1844_v26 }
 0x449   :  { %v1021_v29 = vmul.u32 %v1014_v20, %v1005_v37  ;;  %vm1058_vm12 = vweird.f32 %v1785_v9 }
 0x44a   :  { %v1133_v49 = vshll.u32 %v1132_v39, 30  ;;  %vm1023_vm14 = vc.u32 %v1847_v36, %v1843_v33  ;;  %v1022_v16 = vadd.s32 %v1843_v33, %v1847_v36  ;;  %v1156_v11 = vsub.s32 4, %v1132_v39 }
 0x44b   :  { %v1025_v38 = vsel %vm1023_vm14, %v1024_v27, %v1844_v26 }
 0x44c   :  { %v1134_v50 = vsub.s32 %v1130_v28, %v1133_v49  ;;  %v1026_v0 = vadd.s32 %v1025_v38, %v1021_v29  ;;  %v1157_v52 = vsel %vm1072_vm2, %v1156_v11, %v1132_v39 }
 0x44d   :  { %v1159_v44 = vsel %vm1071_vm3, 0, %v1157_v52 }
 0x44e   :  { %v1136_v53 = vsub.s32 0, %v1134_v50  ;;  %v1027_v51 = vadd.s32 536870912, %v1026_v0  ;;  %v1163_v35 = vadd.s32 3, %v1159_v44 }
 0x450   :  { %v1267_v46 = vmin.u32 %v1136_v53, %v1134_v50  ;;  %v1028_v55 = vshrl.u32 %v1027_v51, 30  ;;  %v1164_v33 = vand.u32 3, %v1163_v35 }
 0x452   :  { %v1138_v40 = vclz %v1267_v46  ;;  %v1029_v41 = vshll.u32 %v1028_v55, 30  ;;  %v1052_v25 = vsub.s32 4, %v1028_v55  ;;  %vm1169_vm5 = vcmp.eq.s32.totalorder %v1164_v33, 2 }
 0x453   :  { %vm1166_vm6 = vcmp.eq.s32.totalorder %v1164_v33, 0  ;;  %vm1165_vm7 = vcmp.lt.s32.totalorder %v1164_v33, 2 }
 0x454   :  { %v1268_v2 = vadd.s32 4294967294, %v1138_v40  ;;  %v1030_v3 = vsub.s32 %v1026_v0, %v1029_v41  ;;  %v1053_v19 = vsel %vm968_vm0, %v1052_v25, %v1028_v55  ;;  %v1185_v41 = vpop.permute.xlu1 %1184 }
 0x455   :  { %v1055_v36 = vsel %vm967_vm4, 0, %v1053_v19 }
 0x456   :  { %vm1269_vm15 = vcmp.lt.s32.totalorder %v1268_v2, 0  ;;  %v1032_v45 = vsub.s32 0, %v1030_v3  ;;  %v1059_v27 = vadd.s32 3, %v1055_v36 }
 0x457   :  { %v1141_v61 = vsel %vm1269_vm15, 0, %v1268_v2 }
 0x458   :  { %v1142_v57 = vsub.s32 32, %v1141_v61  ;;  %v1146_v4 = vsub.s32 4294967266, %v1141_v61  ;;  %v1263_v6 = vmin.u32 %v1032_v45, %v1030_v3  ;;  %v1143_v7 = vshll.u32 %v1134_v50, %v1141_v61  ;;  %v1180_v45 = vpop.permute.xlu0 %1179 }
 0x459   :  { %v1060_v0 = vand.u32 3, %v1059_v27 }
 0x45a   :  { %v1144_v23 = vshrl.u32 %v1126_v47, %v1142_v57  ;;  %v1147_v62 = vadd.s32 127, %v1146_v4  ;;  %v1034_v13 = vclz %v1263_v6 }
 0x45b   :  { %vm1065_vm9 = vcmp.eq.s32.totalorder %v1060_v0, 2  ;;  %vm1062_vm10 = vcmp.eq.s32.totalorder %v1060_v0, 0  ;;  %vm1061_vm11 = vcmp.lt.s32.totalorder %v1060_v0, 2 }
 0x45c   :  { %v1145_v5 = vor.u32 %v1144_v23, %v1143_v7  ;;  %v1148_v54 = vshll.u32 %v1147_v62, 23  ;;  %v1264_v12 = vadd.s32 4294967294, %v1034_v13 }
 0x45e   :  { %v1149_v60 = vor.u32 4788187, %v1148_v54  ;;  %vm1265_vm1 = vcmp.lt.s32.totalorder %v1264_v12, 0  ;;  %v1152_v18 = vcvt.s32.f32 %v1145_v5  ;;  %v1201_v5 = vpop.permute.xlu0 %1200 }
 0x45f   :  { %v1037_v20 = vsel %vm1265_vm1, 0, %v1264_v12 }
 0x460   :  { %v1150_v1 = vand.u32 2147483647, %v1149_v60  ;;  %v1038_v43 = vsub.s32 32, %v1037_v20  ;;  %v1042_v15 = vsub.s32 4294967266, %v1037_v20  ;;  %v1039_v30 = vshll.u32 %v1030_v3, %v1037_v20 }
 0x462   :  { %v1153_v10 = vmul.f32 %v1152_v18, %v1150_v1  ;;  %v1040_v56 = vshrl.u32 %v1022_v16, %v1038_v43  ;;  %v1043_v21 = vadd.s32 127, %v1042_v15 }
 0x464   :  { %v1154_v42 = vxor.u32 2147483648, %v1153_v10  ;;  %v1041_v48 = vor.u32 %v1040_v56, %v1039_v30  ;;  %v1044_v63 = vshll.u32 %v1043_v21, 23 }
 0x466   :  { %v1155_v22 = vsel %vm1072_vm2, %v1154_v42, %v1153_v10  ;;  %v1045_v28 = vor.u32 4788187, %v1044_v63  ;;  %v1048_v32 = vcvt.s32.f32 %v1041_v48 }
 0x467   :  { %v1158_v24 = vsel %vm1071_vm3, %v1783_v8, %v1155_v22 }
 0x468   :  { %1384 = vcosq.f32 %v1158_v24  ;;  %v1046_v31 = vand.u32 2147483647, %v1045_v28 }
 0x469   :  { %1386 = vsinq.f32 %v1158_v24 }
 0x46a   :  { %v1049_v34 = vmul.f32 %v1048_v32, %v1046_v31 }
 0x46c   :  { %v1050_v59 = vxor.u32 2147483648, %v1049_v34 }
 0x46e   :  { %v1051_v58 = vsel %vm968_vm0, %v1050_v59, %v1049_v34 }
 0x46f   :  { %v1054_v26 = vsel %vm967_vm4, %v1785_v9, %v1051_v58 }
 0x470   :  { %1388 = vcosq.f32 %v1054_v26 }
 0x471   :  { %1390 = vsinq.f32 %v1054_v26 }
 0x472   :  { %v1385_v14 = vpop.eup %1384 }
 0x473   :  { %v1387_v39 = vpop.eup %1386  ;;  %v1170_v37 = vxor.u32 2147483648, %v1385_v14 }
 0x474   :  { %v1167_v49 = vxor.u32 2147483648, %v1387_v39 }
 0x475   :  { %v1171_v29 = vsel %vm1169_vm5, %v1170_v37, %v1387_v39 }
 0x476   :  { %v1168_v50 = vsel %vm1166_vm6, %v1385_v14, %v1167_v49 }
 0x477   :  { %v1172_v17 = vsel %vm1165_vm7, %v1168_v50, %v1171_v29 }
 0x478   :  { %v1173_v38 = vsel %vm1162_vm8, nan, %v1172_v17 }
 0x479   :  { %v1188_v61 = vmul.f32 %v1185_v41, %v1173_v38 }
 0x47a   :  { %v1389_v53 = vpop.eup %1388 }
 0x47b   :  { %v1391_v51 = vpop.eup %1390  ;;  %v1066_v46 = vxor.u32 2147483648, %v1389_v53 }
 0x47c   :  { %v1063_v55 = vxor.u32 2147483648, %v1391_v51 }
 0x47d   :  { %v1067_v40 = vsel %vm1065_vm9, %v1066_v46, %v1391_v51 }
 0x47e   :  { %v1064_v2 = vsel %vm1062_vm10, %v1389_v53, %v1063_v55 }
 0x47f   :  { %v1068_v3 = vsel %vm1061_vm11, %v1064_v2, %v1067_v40 }
 0x480   :  { %v1069_v47 = vsel %vm1058_vm12, nan, %v1068_v3 }
 0x481   :  { %v1187_v8 = vmul.f32 %v1180_v45, %v1069_v47 }
 0x483   :  { %v1189_v57 = vadd.f32 %v1188_v61, %v1187_v8 }
 0x485   :  { %v1190_v4 = vrot.slane %v1189_v57, 4 }
 0x487   :  { %v1191_v6 = vadd.f32 %v1190_v4, %v1189_v57 }
 0x489   :  { %v1192_v7 = vrot.slane %v1191_v6, 2 }
 0x48b   :  { %v1193_v23 = vadd.f32 %v1192_v7, %v1191_v6 }
 0x48d   :  { %v1194_v62 = vrot.slane %v1193_v23, 1 }
 0x48f   :  { %v1195_v13 = vadd.f32 %v1194_v62, %v1193_v23 }
 0x491   :  { %v1203_v54 = vadd.f32 %v1201_v5, %v1195_v13 }
 0x493   :  { %1204 = vst [vmem:[#allocation2] sm:$0x1] %v1203_v54 }
 0x494   :  { %1403 = shalt.err (!%p1400_p4)
}
 0x495   :  { %s1404_s28 = scalar_lea.hbm %s1879_s3, 16 }
 0x496   :  { %p1405_p5 = scmp.ne.s32.totalorder %s1879_s3, %s1404_s28  ;;  %p1408_p6 = scmp.lt.u32.totalorder %s1404_s28, %s1879_s3 }
 0x498   :  { %p1410_p7 = pnand %p1408_p6, %p1405_p5 }
 0x49a   :  { %1413 = shalt.err (!%p1410_p7)
}
 0x49b   :  { %1214 = dma.vmem_to_hbm [thread:$0]  %s1212_s23, 16, %s1879_s3, [#allocation3]  }
 0x49c   :  { %1414 = dma.done.wait [#allocation3], 16  }
 0x49d   :  { %1415 = vsyncadd [#allocation3], 4294967280 }
 0x49e   :  { %1218 = vsyncpa [#allocation3], 1 }

</bundles_post_ra>
